<compile_context>
chip_gen: v5e
topology: v5e:2x2
jax: 0.10.0
libtpu: 0.0.40
codegen_flags: <defaults>
</compile_context>

<pallas_src>
import math
import functools
import numpy as np
import jax
import jax.numpy as jnp
from jax.experimental import pallas as pl
from jax.experimental.pallas import tpu as pltpu


# ---------------------------------------------------------------------------
# Parameter construction (deterministic, mirrors AllPassWarp.gen_w_matrix_3d)
# ---------------------------------------------------------------------------
def gen_w_matrix_3d(warp_matrix_size: int) -> np.ndarray:
    n = warp_matrix_size
    max_poly = 2 * n
    g = np.zeros((n, n, max_poly), dtype=np.float64)
    g[0, 0, 0] = 1.0
    for m in range(0, n):
        for k in range(1, n):
            k_fac = 1.0 / math.factorial(k - 1) if k > 0 else 1.0
            for q in range(max(0, k - m), k + 1):
                w = math.comb(k, q) * math.pow(-1, q + m + k)
                w_fac = math.factorial(m + q - 1) if m + q - 1 > 0 else 1.0
                w_fac /= math.factorial(m + q - k) if m + q - k > 0 else 1.0
                w *= w_fac * k_fac
                degree = 2 * q + m - k
                if degree < max_poly:
                    g[m, k, degree] = w
    g = np.transpose(g, (1, 0, 2)).copy()          # torch.transpose(grad_matrix, 0, 1)
    return g.astype(np.float32)                    # (n, n, 2n)


def _combine_two(a1, a2):
    return (a1 + a2) / (1.0 + a1 * a2)


def combine_warping_parameters(alphas):
    if isinstance(alphas, (list, tuple)):
        return functools.reduce(_combine_two, alphas)
    return alphas


# ---------------------------------------------------------------------------
# Constant LHS for the factored contraction.
#   lhs[c, k1*n + j, k0*n + i] = scale * w3d[i, j, k1*s + k0]
# so that, with x_tilde[k0*n + i, l] = a_l^{k0} * x_c[i, l],
#   y_c[j, l] = sum_{k1} a_l^{s*k1} * (lhs[c] @ x_tilde)[k1*n + j, l]
#             = sum_k a_l^k sum_i w3d[i, j, k] x_c[i, l]      (the warp)
# The /2 on input features {0, n, 2n} is folded into columns i == 0 and the *2
# on output features {0, n, 2n} into rows j == 0 (both only for chunks c < 3).
# ---------------------------------------------------------------------------
def build_warp_lhs(w3d, n, num_chunks, s, g):
    w3d = np.asarray(w3d, dtype=np.float64)
    two_n = 2 * n
    lhs = np.zeros((num_chunks, g * n, s * n), dtype=np.float64)
    for c in range(num_chunks):
        scaled = c < 3                      # chunk feeds features 0 / n / 2n
        for k1 in range(g):
            for k0 in range(s):
                k = k1 * s + k0
                if k >= two_n:
                    continue
                for j in range(n):
                    for i in range(n):
                        v = w3d[i, j, k]
                        if scaled and i == 0:
                            v *= 0.5        # in_tensor[..., 0:3n:n] /= 2
                        if scaled and j == 0:
                            v *= 2.0        # out_tensor[..., 0:3n:n] *= 2
                        lhs[c, k1 * n + j, k0 * n + i] = v
    return lhs.astype(np.float32)


# ---------------------------------------------------------------------------
# Pallas kernel: one tile of `tile` lane columns of the transposed (F, T*B)
# layout, processed in register-resident sub-blocks of `sub` columns.
# ---------------------------------------------------------------------------
def _allpass_warp_kernel(alpha_ref, x_ref, lhs_ref, out_ref, *,
                         n, num_chunks, s, g, sub):
    f32 = jnp.float32
    tile = x_ref.shape[-1]
    assert tile % sub == 0                    # guaranteed by the wrapper (static)
    n_sub = tile // sub

    # Static loop over lane sub-blocks: powers of alpha, x_tilde, the matmul
    # result and the accumulator all stay in vregs (no VMEM scratch, no spill
    # of full-tile power arrays).
    for jb in range(n_sub):
        col = jb * sub

        # alpha for this sub-block, broadcast once to the (n, sub) shape every
        # FMA below uses (per sub-block so it stays register-resident).
        a = jnp.broadcast_to(alpha_ref[:, col:col + sub].astype(f32), (n, sub))

        # Inner powers a^1 .. a^{s-1} (a^0 is the identity) and a^s.
        pw = [None]                               # pw[k0] == a^{k0}; None means 1
        for k0 in range(1, s):
            pw.append(a if k0 == 1 else pw[-1] * a)
        a_s = (pw[-1] * a) if s > 1 else a        # a^s

        # Outer powers a^s, a^{2s}, ..., a^{(g-1)s} via a running product.
        outer = []
        for k1 in range(1, g):
            outer.append(a_s if k1 == 1 else outer[-1] * a_s)

        for c in range(num_chunks):
            # n=8-row slices are tile-aligned for f32 blocks; for bf16 inputs
            # slice at 16-row granularity (or cast the block to f32 first).
            x_c = x_ref[c * n:(c + 1) * n, col:col + sub].astype(f32)   # (n, sub)

            # x_tilde[k0*n + i, :] = a^{k0} * x_c[i, :]
            x_tilde = jnp.concatenate(
                [x_c if p is None else p * x_c for p in pw], axis=0)    # (s*n, sub)

            # One constant-LHS MXU matmul contracts the feature index i and
            # the low polynomial bits k0 simultaneously.  Kept as a single
            # (g*n, s*n) @ (s*n, sub) dot: the MXU is not the binding unit,
            # splitting it per group would only re-stream x_tilde.
            z = jnp.dot(lhs_ref[c], x_tilde, preferred_element_type=f32)  # (g*n, sub)

            # Remaining polynomial contraction: g dense VPU FMAs accumulated in
            # registers, stored exactly once per chunk.
            acc = z[0:n, :]
            for k1 in range(1, g):
                acc = acc + outer[k1 - 1] * z[k1 * n:(k1 + 1) * n, :]

            out_ref[c * n:(c + 1) * n, col:col + sub] = acc.astype(out_ref.dtype)


# ---------------------------------------------------------------------------
# Wrapper: layout plumbing (transpose) + tile selection + pallas_call
# ---------------------------------------------------------------------------
def _round_up(x, m):
    return (x + m - 1) // m * m


def _cdiv(a, b):
    return (a + b - 1) // b


def allpass_warp_forward(in_tensor, alphas, w_matrix_3d, warp_matrix_size,
                         tile_cols=8192, sub_cols=256, power_split=None):
    n = warp_matrix_size
    max_poly = 2 * n
    T, B, F = in_tensor.shape
    assert F % n == 0, "feature dim must be a multiple of warp_matrix_size"
    num_chunks = F // n
    TB = T * B

    # MXU/VPU split of the 2n-term polynomial: s low powers go through the
    # matmul (pre-scaled copies of x), g = ceil(2n/s) groups stay on the VPU.
    if power_split is None:
        power_split = math.isqrt(max_poly - 1) + 1        # ceil(sqrt(2n))
    s = max(1, min(power_split, max_poly))
    g = _cdiv(max_poly, s)

    combined = combine_warping_parameters(alphas)          # (T, B, 1)

    # ---- Tile selection (lane-dense: merged T*B axis on the lane dim) ------
    # Big tiles amortize the ~0.35us per-grid-step pipeline overhead; keep at
    # least 2 grid steps when possible so ("parallel",) can shard across both
    # TensorCores on v7x.  No wrapper-side jnp.pad (saves a full HBM pass):
    # Pallas masks the ragged last block's out-of-bounds stores, and every
    # column is fully independent, so garbage in padded input columns never
    # affects valid output columns.
    tile = min(_round_up(int(tile_cols), 128), _round_up(TB, 128))
    if TB > 128 and _cdiv(TB, tile) < 2:
        tile = _round_up(_cdiv(TB, 2), 128)
    if TB < 128:
        tile = TB              # single block == full (tiny) array dims
    grid = _cdiv(TB, tile)

    sub = min(int(sub_cols), tile)          # in-kernel sub-block width
    if tile % sub != 0:
        sub = math.gcd(tile, sub)

    # Layout plumbing: (T,B,F) -> (F, TB) so the big merged axis is lane-dense.
    # If this op runs inside a larger jit, XLA can fuse these transposes with
    # neighbouring ops; folding the input transpose into the kernel via the
    # (otherwise idle) XLU is a further option if profiling shows them
    # materialized as separate HBM passes.
    x_t = in_tensor.reshape(TB, F).T                       # (F, TB)
    a_t = combined.reshape(1, TB).astype(jnp.float32)      # (1, TB)

    lhs = jnp.asarray(build_warp_lhs(w_matrix_3d, n, num_chunks, s, g))

    kernel = functools.partial(_allpass_warp_kernel, n=n, num_chunks=num_chunks,
                               s=s, g=g, sub=sub)

    out_t = pl.pallas_call(
        kernel,
        out_shape=jax.ShapeDtypeStruct((F, TB), in_tensor.dtype),
        grid_spec=pltpu.PrefetchScalarGridSpec(
            num_scalar_prefetch=0,
            grid=(grid,),
            in_specs=[
                pl.BlockSpec((1, tile), lambda i: (0, i)),              # alphas
                pl.BlockSpec((F, tile), lambda i: (0, i)),              # features
                pl.BlockSpec((num_chunks, g * n, s * n),
                             lambda i: (0, 0, 0)),                      # constants
            ],
            out_specs=pl.BlockSpec((F, tile), lambda i: (0, i)),
        ),
        compiler_params=pltpu.CompilerParams(
            dimension_semantics=("parallel",),
            # Working set at tile=8192 is only a few MiB; 32 MiB is safe on
            # v5e (16 MiB scoped default), v6e and v7x (64 MiB physical).
            vmem_limit_bytes=32 * 1024 * 1024,
        ),
    )(a_t, x_t, lhs)

    out = out_t.T.reshape(T, B, F)
    return out, combined


# ---------------------------------------------------------------------------
# Pure-JAX reference (mirrors the PyTorch forward)
# ---------------------------------------------------------------------------
def reference_forward(in_tensor, alphas, w3d, n):
    T, B, F = in_tensor.shape
    TB = T * B
    combined = combine_warping_parameters(alphas)
    a = combined.reshape(TB, 1).astype(jnp.float32)
    powers = jnp.cumprod(jnp.broadcast_to(a, (TB, 2 * n - 1)), axis=-1)
    av = jnp.concatenate([jnp.ones((TB, 1), a.dtype), powers], axis=-1)
    wm = jnp.einsum('ijk,lk->lij', jnp.asarray(w3d), av)     # (TB, n, n)
    x = in_tensor.reshape(TB, F).astype(jnp.float32)
    idx = jnp.arange(F)
    sel = (idx % n == 0) & (idx < 3 * n)
    x = jnp.where(sel[None, :], x * 0.5, x)
    xs = x.reshape(TB, F // n, n)
    y = jnp.einsum('bci,bij->bcj', xs, wm).reshape(TB, F)
    y = jnp.where(sel[None, :], y * 2.0, y)
    return y.reshape(T, B, F).astype(in_tensor.dtype), combined


if __name__ == "__main__":
    warp_matrix_size = 8          # n
    T, B = 32, 8                  # time, batch -> T*B = 256 -> 2 lane-dense 128-wide tiles
    F = 3 * warp_matrix_size      # 24 features = 3 chunks of size n

    w_matrix_3d = gen_w_matrix_3d(warp_matrix_size)   # (n, n, 2n)

    key = jax.random.PRNGKey(0)
    k1, k2, k3 = jax.random.split(key, 3)
    in_tensor = jax.random.normal(k1, (T, B, F), dtype=jnp.float32)
    # Two warping parameter streams, combined with (a1+a2)/(1+a1*a2).
    alphas = [
        jax.random.uniform(k2, (T, B, 1), jnp.float32, minval=-0.3, maxval=0.3),
        jax.random.uniform(k3, (T, B, 1), jnp.float32, minval=-0.3, maxval=0.3),
    ]

    out, combined = allpass_warp_forward(in_tensor, alphas, w_matrix_3d,
                                         warp_matrix_size)
    jax.block_until_ready(out)

    ref_out, ref_comb = reference_forward(in_tensor, alphas, w_matrix_3d,
                                          warp_matrix_size)
    assert out.shape == in_tensor.shape and out.dtype == in_tensor.dtype
    assert jnp.allclose(out, ref_out, atol=1e-3, rtol=1e-3), "kernel mismatch vs reference"
    assert jnp.allclose(combined, ref_comb), "combined alphas mismatch"

    print("KERNEL_OK")
</pallas_src>

<mosaic_0001>
module attributes {stable_mosaic.version = 11 : i64} {
  func.func @_allpass_warp_kernel(%arg0: i32, %arg1: memref<1x128xf32, #tpu.memory_space<vmem>>, %arg2: memref<24x128xf32, #tpu.memory_space<vmem>>, %arg3: memref<3x32x32xf32, #tpu.memory_space<vmem>>, %arg4: memref<24x128xf32, #tpu.memory_space<vmem>>) attributes {dimension_semantics = [#tpu.dimension_semantics<parallel>], iteration_bounds = array<i64: 2>, scalar_prefetch = 0 : i64, scratch_operands = 0 : i64, tpu.core_type = #tpu.core_type<tc>, window_params = [{transform_indices = @transform_0, window_bounds = array<i64: 1, 128>}, {transform_indices = @transform_1, window_bounds = array<i64: 24, 128>}, {pipeline_mode = #tpu.pipeline_mode<synchronous>, transform_indices = @transform_2, window_bounds = array<i64: 3, 32, 32>}, {transform_indices = @transform_3, window_bounds = array<i64: 24, 128>}]} {
    %c0 = arith.constant 0 : index
    %c0_0 = arith.constant 0 : index
    %0 = vector.load %arg1[%c0, %c0_0] : memref<1x128xf32, #tpu.memory_space<vmem>>, vector<1x128xf32>
    %1 = vector.shape_cast %0 : vector<1x128xf32> to vector<1x128xf32>
    %2 = vector.broadcast %1 : vector<1x128xf32> to vector<8x128xf32>
    %3 = arith.mulf %2, %2 : vector<8x128xf32>
    %4 = arith.mulf %3, %2 : vector<8x128xf32>
    %5 = arith.mulf %4, %2 : vector<8x128xf32>
    %6 = arith.mulf %5, %5 : vector<8x128xf32>
    %7 = arith.mulf %6, %5 : vector<8x128xf32>
    %c0_1 = arith.constant 0 : index
    %c0_2 = arith.constant 0 : index
    %8 = vector.load %arg2[%c0_1, %c0_2] : memref<24x128xf32, #tpu.memory_space<vmem>>, vector<8x128xf32>
    %9 = arith.mulf %2, %8 : vector<8x128xf32>
    %10 = arith.mulf %3, %8 : vector<8x128xf32>
    %11 = arith.mulf %4, %8 : vector<8x128xf32>
    %12 = tpu.concatenate %8, %9, %10, %11 in 0 : vector<8x128xf32>, vector<8x128xf32>, vector<8x128xf32>, vector<8x128xf32> -> vector<32x128xf32>
    %c0_3 = arith.constant 0 : index
    %c0_4 = arith.constant 0 : index
    %c0_5 = arith.constant 0 : index
    %13 = vector.load %arg3[%c0_3, %c0_4, %c0_5] : memref<3x32x32xf32, #tpu.memory_space<vmem>>, vector<1x32x32xf32>
    %14 = vector.shape_cast %13 : vector<1x32x32xf32> to vector<32x32xf32>
    %cst = arith.constant dense<0.000000e+00> : vector<32x128xf32>
    %15 = tpu.matmul %14, %12, %cst {dimension_numbers = #tpu.dot_dimension_numbers<[1], [0], [0], [1], [0, 0, 1, 1], [], []>} : vector<32x32xf32>, vector<32x128xf32>, vector<32x128xf32> -> vector<32x128xf32>
    %16 = vector.extract_strided_slice %15 {offsets = [0, 0], sizes = [8, 128], strides = [1, 1]} : vector<32x128xf32> to vector<8x128xf32>
    %17 = vector.extract_strided_slice %15 {offsets = [8, 0], sizes = [8, 128], strides = [1, 1]} : vector<32x128xf32> to vector<8x128xf32>
    %18 = arith.mulf %5, %17 : vector<8x128xf32>
    %19 = arith.addf %16, %18 : vector<8x128xf32>
    %20 = vector.extract_strided_slice %15 {offsets = [16, 0], sizes = [8, 128], strides = [1, 1]} : vector<32x128xf32> to vector<8x128xf32>
    %21 = arith.mulf %6, %20 : vector<8x128xf32>
    %22 = arith.addf %19, %21 : vector<8x128xf32>
    %23 = vector.extract_strided_slice %15 {offsets = [24, 0], sizes = [8, 128], strides = [1, 1]} : vector<32x128xf32> to vector<8x128xf32>
    %24 = arith.mulf %7, %23 : vector<8x128xf32>
    %25 = arith.addf %22, %24 : vector<8x128xf32>
    %c0_6 = arith.constant 0 : index
    %c0_7 = arith.constant 0 : index
    %26 = vector.load %arg4[%c0_6, %c0_7] : memref<24x128xf32, #tpu.memory_space<vmem>>, vector<8x128xf32>
    tpu.vector_store %arg4[%c0_6, %c0_7], %25 {strides = array<i32>} : memref<24x128xf32, #tpu.memory_space<vmem>>, vector<8x128xf32>,
    %c8 = arith.constant 8 : index
    %c0_8 = arith.constant 0 : index
    %27 = vector.load %arg2[%c8, %c0_8] : memref<24x128xf32, #tpu.memory_space<vmem>>, vector<8x128xf32>
    %28 = arith.mulf %2, %27 : vector<8x128xf32>
    %29 = arith.mulf %3, %27 : vector<8x128xf32>
    %30 = arith.mulf %4, %27 : vector<8x128xf32>
    %31 = tpu.concatenate %27, %28, %29, %30 in 0 : vector<8x128xf32>, vector<8x128xf32>, vector<8x128xf32>, vector<8x128xf32> -> vector<32x128xf32>
    %c1 = arith.constant 1 : index
    %c0_9 = arith.constant 0 : index
    %c0_10 = arith.constant 0 : index
    %32 = vector.load %arg3[%c1, %c0_9, %c0_10] : memref<3x32x32xf32, #tpu.memory_space<vmem>>, vector<1x32x32xf32>
    %33 = vector.shape_cast %32 : vector<1x32x32xf32> to vector<32x32xf32>
    %cst_11 = arith.constant dense<0.000000e+00> : vector<32x128xf32>
    %34 = tpu.matmul %33, %31, %cst_11 {dimension_numbers = #tpu.dot_dimension_numbers<[1], [0], [0], [1], [0, 0, 1, 1], [], []>} : vector<32x32xf32>, vector<32x128xf32>, vector<32x128xf32> -> vector<32x128xf32>
    %35 = vector.extract_strided_slice %34 {offsets = [0, 0], sizes = [8, 128], strides = [1, 1]} : vector<32x128xf32> to vector<8x128xf32>
    %36 = vector.extract_strided_slice %34 {offsets = [8, 0], sizes = [8, 128], strides = [1, 1]} : vector<32x128xf32> to vector<8x128xf32>
    %37 = arith.mulf %5, %36 : vector<8x128xf32>
    %38 = arith.addf %35, %37 : vector<8x128xf32>
    %39 = vector.extract_strided_slice %34 {offsets = [16, 0], sizes = [8, 128], strides = [1, 1]} : vector<32x128xf32> to vector<8x128xf32>
    %40 = arith.mulf %6, %39 : vector<8x128xf32>
    %41 = arith.addf %38, %40 : vector<8x128xf32>
    %42 = vector.extract_strided_slice %34 {offsets = [24, 0], sizes = [8, 128], strides = [1, 1]} : vector<32x128xf32> to vector<8x128xf32>
    %43 = arith.mulf %7, %42 : vector<8x128xf32>
    %44 = arith.addf %41, %43 : vector<8x128xf32>
    %c8_12 = arith.constant 8 : index
    %c0_13 = arith.constant 0 : index
    %45 = vector.load %arg4[%c8_12, %c0_13] : memref<24x128xf32, #tpu.memory_space<vmem>>, vector<8x128xf32>
    tpu.vector_store %arg4[%c8_12, %c0_13], %44 {strides = array<i32>} : memref<24x128xf32, #tpu.memory_space<vmem>>, vector<8x128xf32>,
    %c16 = arith.constant 16 : index
    %c0_14 = arith.constant 0 : index
    %46 = vector.load %arg2[%c16, %c0_14] : memref<24x128xf32, #tpu.memory_space<vmem>>, vector<8x128xf32>
    %47 = arith.mulf %2, %46 : vector<8x128xf32>
    %48 = arith.mulf %3, %46 : vector<8x128xf32>
    %49 = arith.mulf %4, %46 : vector<8x128xf32>
    %50 = tpu.concatenate %46, %47, %48, %49 in 0 : vector<8x128xf32>, vector<8x128xf32>, vector<8x128xf32>, vector<8x128xf32> -> vector<32x128xf32>
    %c2 = arith.constant 2 : index
    %c0_15 = arith.constant 0 : index
    %c0_16 = arith.constant 0 : index
    %51 = vector.load %arg3[%c2, %c0_15, %c0_16] : memref<3x32x32xf32, #tpu.memory_space<vmem>>, vector<1x32x32xf32>
    %52 = vector.shape_cast %51 : vector<1x32x32xf32> to vector<32x32xf32>
    %cst_17 = arith.constant dense<0.000000e+00> : vector<32x128xf32>
    %53 = tpu.matmul %52, %50, %cst_17 {dimension_numbers = #tpu.dot_dimension_numbers<[1], [0], [0], [1], [0, 0, 1, 1], [], []>} : vector<32x32xf32>, vector<32x128xf32>, vector<32x128xf32> -> vector<32x128xf32>
    %54 = vector.extract_strided_slice %53 {offsets = [0, 0], sizes = [8, 128], strides = [1, 1]} : vector<32x128xf32> to vector<8x128xf32>
    %55 = vector.extract_strided_slice %53 {offsets = [8, 0], sizes = [8, 128], strides = [1, 1]} : vector<32x128xf32> to vector<8x128xf32>
    %56 = arith.mulf %5, %55 : vector<8x128xf32>
    %57 = arith.addf %54, %56 : vector<8x128xf32>
    %58 = vector.extract_strided_slice %53 {offsets = [16, 0], sizes = [8, 128], strides = [1, 1]} : vector<32x128xf32> to vector<8x128xf32>
    %59 = arith.mulf %6, %58 : vector<8x128xf32>
    %60 = arith.addf %57, %59 : vector<8x128xf32>
    %61 = vector.extract_strided_slice %53 {offsets = [24, 0], sizes = [8, 128], strides = [1, 1]} : vector<32x128xf32> to vector<8x128xf32>
    %62 = arith.mulf %7, %61 : vector<8x128xf32>
    %63 = arith.addf %60, %62 : vector<8x128xf32>
    %c16_18 = arith.constant 16 : index
    %c0_19 = arith.constant 0 : index
    %64 = vector.load %arg4[%c16_18, %c0_19] : memref<24x128xf32, #tpu.memory_space<vmem>>, vector<8x128xf32>
    tpu.vector_store %arg4[%c16_18, %c0_19], %63 {strides = array<i32>} : memref<24x128xf32, #tpu.memory_space<vmem>>, vector<8x128xf32>,
    return
  }
  func.func @transform_0(%arg0: i32) -> (i32, i32) {
    %c0_i32 = arith.constant 0 : i32
    %c0_i32_0 = arith.constant 0 : i32
    return %c0_i32, %arg0 : i32, i32
  }
  func.func @transform_1(%arg0: i32) -> (i32, i32) {
    %c0_i32 = arith.constant 0 : i32
    %c0_i32_0 = arith.constant 0 : i32
    return %c0_i32, %arg0 : i32, i32
  }
  func.func @transform_2(%arg0: i32) -> (i32, i32, i32) {
    %c0_i32 = arith.constant 0 : i32
    %c0_i32_0 = arith.constant 0 : i32
    %c0_i32_1 = arith.constant 0 : i32
    %c0_i32_2 = arith.constant 0 : i32
    return %c0_i32, %c0_i32_0, %c0_i32_1 : i32, i32, i32
  }
  func.func @transform_3(%arg0: i32) -> (i32, i32) {
    %c0_i32 = arith.constant 0 : i32
    %c0_i32_0 = arith.constant 0 : i32
    return %c0_i32, %arg0 : i32, i32
  }
}

</mosaic_0001>

<bundles_post_ra>
// kernel: tpu_custom_call.1
= control target key start
LH: loop header
LB: loop body
LE: loop exit
PB: predicated region body
PF: predicated region fallthrough
CT: control target
= control target key end

     0   :  { %s1032_s0 = inlined_call_operand.hbm [shape: f32[1,256], index: 0, kind: input, shape index: {}]   ;;  %s1033_s1 = inlined_call_operand.hbm [shape: f32[24,256], index: 1, kind: input, shape index: {}]   ;;  %s1034_s2 = inlined_call_operand.hbm [shape: f32[3,32,32], index: 2, kind: input, shape index: {}]   ;;  %s1035_s3 = inlined_call_operand.hbm [shape: f32[24,256], index: 3, kind: output, shape index: {}]  }
   0x1   :  { %1039 = sst [smem:[#allocation15_spill]] %s1034_s2 }
   0x2   :  { %8 = vsyncpa [#allocation3], 0 }
   0x3   :  { %10 = vsyncpa [#allocation3 + $0x1], 0 }
   0x4   :  { %11 = vsyncpa [#allocation6], 0 }
   0x5   :  { %13 = vsyncpa [#allocation6 + $0x1], 0 }
   0x6   :  { %14 = vsyncpa [#allocation4], 0 }
   0x7   :  { %16 = vsyncpa [#allocation4 + $0x1], 0  ;;  %s835_s12 = smov 0   ;;  %s837_s13 = smov 0  }
   0x8   :  { %s839_s14 = smov 0   ;;  %s841_s15 = smov 0  }
   0x9 LB: > { %1040 = sst [smem:[#allocation13_spill]] %s802_s14  ;;  %s859_s19 = sadd.s32 4294967295, %s806_s15   ;;  %s806_s15 = sphi %s841_s15, %s1056_s15   ;;  %s802_s14 = sphi %s839_s14, %s1053_s14   ;;  %s798_s13 = sphi %s837_s13, %s1055_s13   ;;  %s794_s12 = sphi %s835_s12, %s1054_s12  }
   0xa   : > { %s1041_s2 = sld [smem:[#allocation15_spill]]  ;;  %p538_p0 = scmp.ge.s32.totalorder %s806_s15, 1 }
   0xb   : > { %p43_p1 = scmp.eq.s32.totalorder %s859_s19, 0  ;;  %p126_p2 = scmp.lt.s32.totalorder %s806_s15, 3 }
   0xc   : > { %s808_s21 = smov [#allocation7]   ;;  %s1036_s23 = smov 128  }
   0xd   : > { %p864_p3 = pnand %p538_p0, %p126_p2  ;;  %s139_s22 = sshll.u32 %s808_s21, 4  ;;  %s140_s22 = int_to_ptr.vmem [resolvable:$true] %s139_s22 }
   0xe   : > { %s1037_s24 = smov 8   ;;  %s537_s25 = sadd.s32 4294967294, %s806_s15  }
   0xf   : > { %p583_p4 = pneg %p864_p3  ;;  %s878_s26 = sadd.s32 1, %s806_s15  }
  0x10   : > { %s137_s18 = sshll.u32 %s1041_s2, 4  ;;  %s29_s27 = sadd.s32 1, %s802_s14  ;;  %s138_s18 = int_to_ptr.hbm [resolvable:$true] %s137_s18 }
  0x11   : > { %p584_p6 = pnand %p583_p4, %p43_p1  ;;  %s26_s28 = ssub.s32 %s806_s15, %s878_s26 }
  0x12   : > { %p36_p7 = scmp.ne.s32.totalorder %s802_s14, %s798_s13  ;;  %p27_p8 = scmp.eq.s32.totalorder %s26_s28, 0 }
  0x13   : > { %586 = dma.hbm_to_vmem [thread:$0]  (!%p584_p6), %s138_s18, 1536, %s140_s22, [#allocation6], %s1036_s23, %s1036_s23, %s1037_s24  }
  0x14   : > { %p37_p9 = scmp.eq.s32.totalorder %s806_s15, 0  ;;  %p42_p10 = scmp.ne.s32.totalorder %s798_s13, %s794_s12 }
  0x15   : > { %p113_p11 = scmp.eq.s32.totalorder %s859_s19, 1  ;;  %p119_p2 = scmp.eq.s32.totalorder %s537_s25, 1 }
  0x16   : > { %s890_s29 = scalar_select %p27_p8, %s802_s14, %s29_s27  }
  0x17   : > { %p892_p12 = por %p37_p9, %p36_p7  ;;  %p898_p13 = por %p43_p1, %p42_p10 }
  0x18   : > { %1043 = sst [smem:[#allocation14_spill]] %s890_s29  ;;  %p902_p0 = por %p113_p11, %p36_p7 }
  0x19   : > { %p599_p4 = scmp.lt.s32.totalorder %s806_s15, 2  ;;  %s153_s6 = sand.u32 1, %s802_s14  }
  0x1a   : > { %p908_p6 = por %p119_p2, %p42_p10  ;;  %s159_s10 = scalar_lea.hbm %s1032_s0, %s806_s15 }
  0x1b   : > { %s161_s11 = sshll.u32 %s159_s10, 4  ;;  %s156_s16 = scalar_lea.vmem [#allocation2], %s153_s6  ;;  %s162_s11 = int_to_ptr.hbm [resolvable:$true] %s161_s11 }
  0x1c   : > { %s163_s17 = sshll.u32 %s156_s16, 4  ;;  %p918_p7 = pnand %p599_p4, %p892_p12  ;;  %s164_s17 = int_to_ptr.vmem [resolvable:$true] %s163_s17 }
  0x1d   : > { %s571_s21 = smul.u32 24, %s153_s6  ;;  %s170_s22 = sand.u32 1, %s806_s15  }
  0x1e   : > { %s541_s25 = sshll.u32 %s806_s15, 3  ;;  %s154_s27 = scalar_lea.sflag [#allocation3], %s153_s6 }
  0x1f   : > { %s672_s28 = sshra.s32 %s162_s11, 4  ;;  %p676_p9 = pneg %p918_p7  ;;  %s673_s28 = int_to_ptr.hbm [resolvable:$true] %s672_s28 }
  0x20   : > { %s674_s8 = scalar_lea.hbm %s673_s28, 1  ;;  %s679_s10 = scalar_lea.hbm %s1032_s0, 2 }
  0x21   : > { %p675_p8 = scmp.ne.s32.totalorder %s673_s28, %s674_s8  ;;  %p680_p12 = scmp.lt.s32.totalorder %s673_s28, %s1032_s0 }
  0x22   : > { %p681_p2 = scmp.lt.s32.totalorder %s679_s10, %s674_s8 }
  0x23   : > { %p677_p10 = pnand %p676_p9, %p675_p8 }
  0x24   : > { %p682_p4 = por %p681_p2, %p680_p12 }
  0x25   : > { %p678_p11 = pneg %p677_p10 }
  0x27   : > { %p683_p5 = pnand %p682_p4, %p678_p11 }
  0x29   : > { %686 = shalt.err (!%p683_p5)
}
  0x2a   : > { %590 = dma.hbm_to_vmem [thread:$0]  (!%p918_p7), %s162_s11, 16, %s164_s17, %s154_s27  }
  0x2b   : > { %s174_s6 = scalar_lea.vmem [#allocation5], %s571_s21  ;;  %s178_s30 = scalar_lea.hbm %s1033_s1, %s541_s25 }
  0x2c   : > { %s181_s24 = sshll.u32 %s174_s6, 4  ;;  %s179_s9 = sshll.u32 %s178_s30, 4  ;;  %s182_s24 = int_to_ptr.vmem [resolvable:$true] %s181_s24  ;;  %s180_s9 = int_to_ptr.hbm [resolvable:$true] %s179_s9 }
  0x2d   : > { %s171_s14 = scalar_lea.sflag [#allocation6], %s170_s22  ;;  %s702_s23 = sshra.s32 %s180_s9, 4  ;;  %s703_s23 = int_to_ptr.hbm [resolvable:$true] %s702_s23 }
  0x2e   : > { %s704_s28 = scalar_lea.hbm %s703_s23, 24  ;;  %s709_s17 = scalar_lea.hbm %s1033_s1, 48 }
  0x2f   : > { %p705_p8 = scmp.ne.s32.totalorder %s703_s23, %s704_s28  ;;  %p710_p11 = scmp.lt.s32.totalorder %s703_s23, %s1033_s1 }
  0x30   : > { %p711_p12 = scmp.lt.s32.totalorder %s709_s17, %s704_s28 }
  0x31   : > { %p707_p5 = pnand %p705_p8, %p676_p9 }
  0x32   : > { %p712_p2 = por %p711_p12, %p710_p11 }
  0x33   : > { %p708_p10 = pneg %p707_p5 }
  0x35   : > { %p713_p4 = pnand %p712_p2, %p708_p10 }
  0x37   : > { %716 = shalt.err (!%p713_p4)
}
  0x38   : > { %s811_s2 = smov 256   ;;  %s1049_s29 = smov 8  }
  0x39   : > { %s1050_s22 = smov 128   ;;  %193 = sbr.rel (%p864_p3) target bundleno = 243 (0xf3), region = 32 }
  0x3a   : > { %593 = dma.hbm_to_vmem [thread:$0]  (!%p918_p7), %s180_s9, 384, %s182_s24, %s171_s14, %s811_s2, %s1050_s22, %s1049_s29  }
  0x3b   : > { %s956_s25 = sand.u32 (!%p864_p3), 1, %s798_s13  }
  0x3c   : > { %s196_s10 = scalar_lea.sflag (!%p864_p3), [#allocation3], %s956_s25  ;;  %s198_s16 = scalar_lea.vmem (!%p864_p3), [#allocation2], %s956_s25 }
  0x3e   : > { %777 = dma.done.wait (%p898_p13), %s196_s10, 16  }
  0x3f   : > { %779 = vsyncadd (%p898_p13), %s196_s10, 4294967280  ;;  %s204_s14 = sand.u32 1, %s859_s19   ;;  %s572_s20 = smul.u32 24, %s956_s25 }
  0x40   : > { %s205_s24 = scalar_lea.sflag [#allocation6], %s204_s14 }
  0x41   : > { %s208_s18 = scalar_lea.vmem [#allocation5], %s572_s20 }
  0x42   : > { %781 = dma.done.wait (%p898_p13), %s205_s24, 384  }
  0x43   : > { %783 = vsyncadd (%p898_p13), %s205_s24, 4294966912 }
  0x44   : > { %785 = dma.done.wait (%p43_p1), [#allocation6], 1536  }
  0x45   : > { %787 = vsyncadd (%p43_p1), [#allocation6], 4294965760  ;;  %v976_v0 = vld [vmem:[%s198_s16] ss:$0 sm:$0xff]  ;;  %v307_v3 = vld [vmem:[%s208_s18 + $0x8] sm:$0xff]  ;;  %vm258_vm0 = vcmask 261120  }
  0x46   : > { %v245_v1 = vmul.f32 %v976_v0, %v976_v0  ;;  %v250_v2 = vld [vmem:[%s208_s18] sm:$0xff]  ;;  %v364_v4 = vld [vmem:[%s208_s18 + $0x10] sm:$0xff]  ;;  %v308_v13 = vmul.f32 %v976_v0, %v307_v3  ;;  %s556_s4 = sshll.u32 %s859_s19, 3  ;;  %s240_s23 = scalar_lea.vmem [#allocation8], %s572_s20 }
  0x47   : > { %v251_v12 = vmul.f32 %v976_v0, %v250_v2  ;;  %v365_v14 = vmul.f32 %v976_v0, %v364_v4  ;;  %v254_v15 = vld [vmem:[#allocation7] sm:$0xff]  ;;  %v255_v16 = vld [vmem:[#allocation7 + $0x8] sm:$0xff]  ;;  %v256_v19 = vld [vmem:[#allocation7 + $0x10] sm:$0xff]  ;;  %s432_s9 = scalar_lea.hbm %s1035_s3, %s556_s4  ;;  %s433_s28 = sshll.u32 %s240_s23, 4  ;;  %s434_s28 = int_to_ptr.vmem [resolvable:$true] %s433_s28 }
  0x48   : > { %v246_v5 = vmul.f32 %v976_v0, %v245_v1  ;;  %v252_v9 = vmul.f32 %v250_v2, %v245_v1  ;;  %v309_v10 = vmul.f32 %v307_v3, %v245_v1  ;;  %v366_v11 = vmul.f32 %v364_v4, %v245_v1  ;;  %v313_v17 = vld [vmem:[#allocation7 + $0x28] sm:$0xff]  ;;  %v312_v20 = vld [vmem:[#allocation7 + $0x20] sm:$0xff]  ;;  %v314_v21 = vld [vmem:[#allocation7 + $0x30] sm:$0xff]  ;;  %s435_s19 = sshll.u32 %s432_s9, 4  ;;  %s422_s8 = scalar_lea.sflag [#allocation4], %s956_s25  ;;  %s436_s19 = int_to_ptr.hbm [resolvable:$true] %s435_s19 }
  0x49   : > { %v370_v18 = vld [vmem:[#allocation7 + $0x48] sm:$0xff]  ;;  %v371_v22 = vld [vmem:[#allocation7 + $0x50] sm:$0xff]  ;;  %v257_v23 = vld [vmem:[#allocation7 + $0x18] sm:$0xff]  ;;  %s746_s11 = sshra.s32 %s436_s19, 4  ;;  %s752_s2 = scalar_lea.hbm %s1035_s3, 48  ;;  %s747_s11 = int_to_ptr.hbm [resolvable:$true] %s746_s11 }
  0x4a   : > { %v253_v6 = vmul.f32 %v250_v2, %v246_v5  ;;  %v310_v7 = vmul.f32 %v307_v3, %v246_v5  ;;  %v367_v8 = vmul.f32 %v364_v4, %v246_v5  ;;  %v315_v24 = vld [vmem:[#allocation7 + $0x38] sm:$0xff]  ;;  %v369_v25 = vld [vmem:[#allocation7 + $0x40] sm:$0xff]  ;;  %v247_v29 = vmul.f32 %v976_v0, %v246_v5  ;;  %s748_s17 = scalar_lea.hbm %s747_s11, 24  ;;  %p753_p7 = scmp.lt.s32.totalorder %s747_s11, %s1035_s3 }
  0x4b   : > { %v372_v26 = vld [vmem:[#allocation7 + $0x58] sm:$0xff]  ;;  %p749_p1 = scmp.ne.s32.totalorder %s747_s11, %s748_s17  ;;  %p754_p9 = scmp.lt.s32.totalorder %s752_s2, %s748_s17 }
  0x4c   : > { %283 = vmatpush.msra.mxu0 %v253_v6  ;;  %559 = vmatpush.msra.mxu3 %v253_v6  ;;  %v248_v35 = vmul.f32 %v247_v29, %v247_v29 }
  0x4d   : > { %563 = vmatpush.msra.mxu1 %v310_v7  ;;  %567 = vmatpush.msra.mxu2 %v367_v8  ;;  %p750_p3 = pnand %p749_p1, %p902_p0  ;;  %p755_p8 = por %p754_p9, %p753_p7 }
  0x4e   : > { %284 = vmatpush.msra.mxu0 %v252_v9  ;;  %560 = vmatpush.msra.mxu3 %v252_v9  ;;  %v249_v39 = vmul.f32 %v248_v35, %v247_v29 }
  0x4f   : > { %564 = vmatpush.msra.mxu1 %v309_v10  ;;  %568 = vmatpush.msra.mxu2 %v366_v11  ;;  %p751_p13 = pneg %p750_p3 }
  0x50   : > { %285 = vmatpush.msra.mxu0 %v251_v12  ;;  %561 = vmatpush.msra.mxu3 %v251_v12 }
  0x51   : > { %565 = vmatpush.msra.mxu1 %v308_v13  ;;  %569 = vmatpush.msra.mxu2 %v365_v14  ;;  %p756_p5 = pnand %p755_p8, %p751_p13 }
  0x52   : > { %286 = vmatpush.msra.mxu0 %v250_v2  ;;  %562 = vmatpush.msra.mxu3 %v250_v2 }
  0x53   : > { %566 = vmatpush.msra.mxu1 %v307_v3  ;;  %570 = vmatpush.msra.mxu2 %v364_v4 }
  0x54   : > { %544 = vmatmul.msk.f32.vlgmr.msra.gmra.mxu0 %vm258_vm0, %v254_v15  ;;  %545 = vmatmul.msk.f32.vlgmr.msra.gmra.mxu3 %vm258_vm0, %v255_v16 }
  0x55   : > { %549 = vmatmul.msk.f32.vlgmr.msra.gmra.mxu1 %vm258_vm0, %v313_v17  ;;  %553 = vmatmul.msk.f32.vlgmr.msra.gmra.mxu2 %vm258_vm0, %v370_v18 }
  0x56   : > { %340 = vmatpush.msrb.mxu0 %v310_v7 }
  0x58   : > { %341 = vmatpush.msrb.mxu0 %v309_v10 }
  0x5a   : > { %342 = vmatpush.msrb.mxu0 %v308_v13 }
  0x5c   : > { %343 = vmatpush.msrb.mxu0 %v307_v3  ;;  %546 = vmatmul.msk.f32.gmra.mxu3 %vm258_vm0, %v256_v19 }
  0x5d   : > { %548 = vmatmul.msk.f32.vlgmr.msrb.gmra.mxu0 %vm258_vm0, %v312_v20  ;;  %550 = vmatmul.msk.f32.gmra.mxu1 %vm258_vm0, %v314_v21 }
  0x5e   : > { %554 = vmatmul.msk.f32.gmra.mxu2 %vm258_vm0, %v371_v22  ;;  %397 = vmatpush.msra.mxu0 %v367_v8 }
  0x60   : > { %398 = vmatpush.msra.mxu0 %v366_v11 }
  0x62   : > { %399 = vmatpush.msra.mxu0 %v365_v14 }
  0x64   : > { %400 = vmatpush.msra.mxu0 %v364_v4  ;;  %547 = vmatmul.msk.f32.gmra.mxu3 %vm258_vm0, %v257_v23 }
  0x65   : > { %551 = vmatmul.msk.f32.gmra.mxu1 %vm258_vm0, %v315_v24  ;;  %552 = vmatmul.msk.f32.vlgmr.msra.gmra.mxu0 %vm258_vm0, %v369_v25 }
  0x66   : > { %555 = vmatmul.msk.f32.gmra.mxu2 %vm258_vm0, %v372_v26 }
  0xd1   : > { %v288_v27 = vpop.f32.mrf.mxu0 }
  0xd2   : > { %v348_v28 = vpop.f32.mrf.mxu1 }
  0xd3   : > { %v357_v34 = vmul.f32 %v348_v28, %v247_v29 }
  0xd7   : > { %v291_v30 = vpop.f32.mrf.mxu3 }
  0xd8   : > { %v405_v31 = vpop.f32.mrf.mxu2  ;;  %v300_v41 = vmul.f32 %v291_v30, %v247_v29 }
  0xd9   : > { %v414_v46 = vmul.f32 %v405_v31, %v247_v29 }
  0xda   : > { %v345_v32 = vpop.f32.mrf.mxu0  ;;  %v351_v33 = vpop.f32.mrf.mxu1  ;;  %v301_v49 = vadd.f32 %v300_v41, %v288_v27 }
  0xdb   : > { %v358_v36 = vadd.f32 %v357_v34, %v345_v32  ;;  %v359_v37 = vmul.f32 %v351_v33, %v248_v35 }
  0xdd   : > { %v360_v43 = vadd.f32 %v359_v37, %v358_v36 }
  0xdf   : > { %v294_v38 = vpop.f32.mrf.mxu3 }
  0xe0   : > { %v302_v47 = vmul.f32 %v294_v38, %v248_v35 }
  0xe1   : > { %v408_v40 = vpop.f32.mrf.mxu2 }
  0xe2   : > { %v354_v42 = vpop.f32.mrf.mxu1  ;;  %v402_v45 = vpop.f32.mrf.mxu0  ;;  %v303_v52 = vadd.f32 %v302_v47, %v301_v49  ;;  %v416_v53 = vmul.f32 %v408_v40, %v248_v35 }
  0xe3   : > { %v361_v44 = vmul.f32 %v354_v42, %v249_v39  ;;  %v415_v50 = vadd.f32 %v414_v46, %v402_v45 }
  0xe5   : > { %v362_v48 = vadd.f32 %v361_v44, %v360_v43  ;;  %v417_v56 = vadd.f32 %v416_v53, %v415_v50 }
  0xe7   : > { %363 = vst [vmem:[%s240_s23 + $0x8] sm:$0xff] %v362_v48  ;;  %v297_v51 = vpop.f32.mrf.mxu3 }
  0xe8   : > { %v304_v54 = vmul.f32 %v297_v51, %v249_v39 }
  0xe9   : > { %v411_v55 = vpop.f32.mrf.mxu2 }
  0xea   : > { %v305_v57 = vadd.f32 %v304_v54, %v303_v52  ;;  %v418_v58 = vmul.f32 %v411_v55, %v249_v39 }
  0xec   : > { %306 = vst [vmem:[%s240_s23] sm:$0xff] %v305_v57  ;;  %v419_v59 = vadd.f32 %v418_v58, %v417_v56 }
  0xee   : > { %420 = vst [vmem:[%s240_s23 + $0x10] sm:$0xff] %v419_v59 }
  0xef   : > { %759 = shalt.err (!%p756_p5)
}
  0xf0   : > { %s812_s25 = smov 128   ;;  %s813_s10 = smov 256  }
  0xf1   : > { %s814_s16 = smov 8  }
  0xf2   : > { %581 = dma.vmem_to_hbm [thread:$0]  (%p902_p0), %s434_s28, 384, %s436_s19, %s422_s8, %s812_s25, %s813_s10, %s814_s16  }
  0xf3 PF: > { %s450_s14 = sand.u32 1, %s794_s12   ;;  %p1051_p10 = scmp.ge.s32.totalorder %s806_s15, 2 }
  0xf4   : > { %s451_s20 = scalar_lea.sflag [#allocation4], %s450_s14 }
  0xf5   : > { %p595_p11 = pnand %p1051_p10, %p908_p6 }
  0xf7   : > { %p596_p12 = pneg %p595_p11 }
  0xf9   : > { %789 = dma.done.wait (%p596_p12), %s451_s20, 384  }
  0xfa   : > { %791 = vsyncadd (%p596_p12), %s451_s20, 4294966912  ;;  %s1052_s24 = sld [smem:[#allocation13_spill]]  ;;  %p19_p2 = scmp.ge.s32.totalorder %s878_s26, 4  }
  0xfb   : > { %s1053_s14 = sld [smem:[#allocation14_spill]]  ;;  %s1054_s12 = smov %s798_s13 }
  0xfc   : > { %s1056_s15 = smov %s878_s26  ;;  %21 = sbr.rel (!%p19_p2) target bundleno = 9 (0x9), region = 96 }
 0x100   : > { %s1055_s13 = smov %s1052_s24 }
 0x101   :  { %457 = vsyncpa [#allocation3], 1 }
 0x102   :  { %459 = vsyncpa [#allocation3 + $0x1], 1 }
 0x103   :  { %460 = vsyncpa [#allocation6], 1 }
 0x104   :  { %462 = vsyncpa [#allocation6 + $0x1], 1 }
 0x105   :  { %463 = vsyncpa [#allocation4], 1 }
 0x106   :  { %465 = vsyncpa [#allocation4 + $0x1], 1 }

</bundles_post_ra>
